<compile_context>
chip_gen: v6e
topology: v6e:2x2x1
jax: 0.10.0
libtpu: 0.0.40
codegen_flags: <defaults>
</compile_context>

<pallas_src>
import math
import functools

import jax
import jax.numpy as jnp
from jax import lax
from jax.experimental import pallas as pl
from jax.experimental.pallas import tpu as pltpu


def lagrange_weights(order: int, os_factor: float):
    """Exact re-implementation of the __init__ kernel construction."""
    if os_factor >= 2:
        delta = os_factor - math.floor(os_factor) + 1
    else:
        delta = os_factor - 1
    w = [1.0] * (order + 1)
    for n in range(order + 1):
        for k in range(order + 1):
            if k != n:
                w[n] *= (delta - k) / (n - k)
    return w  # python floats, baked into the kernel as constants


def _round_up(x: int, m: int) -> int:
    return ((x + m - 1) // m) * m


def _lagrange_rnn_kernel(x_ref, wih_ref, whh_ref, bias_ref, states_ref, prev_ref,
                         *, lag, P, TB, BB, in_dim, Hp):
    # New batch chunk -> reset the state history (h_{<0} == 0).
    @pl.when(pl.program_id(1) == 0)
    def _():
        prev_ref[...] = jnp.zeros_like(prev_ref)

    wih = wih_ref[...]     # (in_dim, Hp), constant index_map -> fetched once
    whh = whh_ref[...]     # (Hp, Hp)
    bias = bias_ref[...]   # (1, Hp)

    def step_block(j, carry):
        base = pl.multiple_of(j * P, P)

        # Fused input projection for the next P timesteps: one MXU matmul over
        # P*BB rows (z never touches HBM).  BB % 8 == 0, so the reshapes are
        # pure tile relabelings.
        xs = x_ref[pl.ds(base, P)]                              # (P, BB, in_dim)
        z = jnp.dot(xs.reshape(P * BB, in_dim), wih,
                    preferred_element_type=jnp.float32) + bias
        z = z.reshape(P, BB, Hp)

        # Serial recurrence.  TB % P == 0 so (global_t mod P) == k: all
        # circular-buffer slots below are compile-time constants.
        for k in range(P):
            h_read = jnp.float32(lag[0]) * prev_ref[(k - 1) % P]
            for n in range(1, P):
                h_read = h_read + jnp.float32(lag[n]) * prev_ref[(k - 1 - n) % P]

            rec = jnp.dot(h_read.astype(whh.dtype), whh,
                          preferred_element_type=jnp.float32)
            h = jnp.tanh(z[k] + rec)

            states_ref[base + k] = h.astype(states_ref.dtype)
            prev_ref[k] = h
        return carry

    lax.fori_loop(0, TB // P, step_block, 0, unroll=False)


def lagrange_interp_rnn(x, w_ih, w_hh, b_ih, b_hh, *, order, os_factor,
                        time_block=128, batch_block=128,
                        mxu_dtype=jnp.float32):
    """x: (B, T, I) float32. Returns (states (B, T, H), h_last (B, H))."""
    B, T, I = x.shape
    H = w_ih.shape[0]
    P = order + 1

    # epsilon from the module; only the epsilon == 1 recurrence is implemented.
    epsilon = (math.floor(os_factor) - 1) if os_factor >= 2 else 1
    assert epsilon == 1, "TODO(synk): epsilon != 1 (os_factor >= 3) unsupported"

    lag = lagrange_weights(order, os_factor)

    # Lane-dense hidden, full-sublane batch chunks, time chunks multiple of P.
    Hp = _round_up(H, 128)
    BB = min(_round_up(B, 8), max(8, (batch_block // 8) * 8))
    Bp = _round_up(B, BB)
    TB = min(_round_up(T, P), max(P, (time_block // P) * P))
    Tp = _round_up(T, TB)

    # Time-major, zero-padded input (padded batch rows / timesteps are wasted
    # work only; they are sliced off below).
    x_t = jnp.zeros((Tp, Bp, I), jnp.float32).at[:T, :B].set(
        jnp.transpose(x, (1, 0, 2)))

    # Padded, pre-transposed weights: zeros in padded rows/cols keep the extra
    # hidden lanes identically zero through the whole recurrence.
    wih_t = jnp.zeros((I, Hp), jnp.float32).at[:, :H].set(jnp.transpose(w_ih))
    whh_t = jnp.zeros((Hp, Hp), jnp.float32).at[:H, :H].set(jnp.transpose(w_hh))
    whh_t = whh_t.astype(mxu_dtype)           # bf16 option (numerics tradeoff)
    bias = jnp.zeros((1, Hp), jnp.float32).at[0, :H].set(b_ih + b_hh)

    kernel = functools.partial(_lagrange_rnn_kernel, lag=lag, P=P, TB=TB,
                               BB=BB, in_dim=I, Hp=Hp)

    grid = (Bp // BB, Tp // TB)

    # Explicit VMEM budget: double-buffered x/out blocks + weights + scratch.
    xblk = TB * BB * I * 4
    oblk = TB * BB * Hp * 4
    wbytes = Hp * Hp * jnp.dtype(mxu_dtype).itemsize + I * Hp * 4 + Hp * 4
    scratch = P * BB * Hp * 4
    needed = 2 * (xblk + oblk + wbytes) + scratch
    # 48 MiB cap is safe on v5e/v6e (128 MiB) and v7x (64 MiB) alike.
    vmem_limit = int(min(max(2 * needed, 32 << 20), 48 << 20))

    states_tm = pl.pallas_call(
        kernel,
        out_shape=jax.ShapeDtypeStruct((Tp, Bp, Hp), jnp.float32),
        grid_spec=pltpu.PrefetchScalarGridSpec(
            num_scalar_prefetch=0,
            grid=grid,
            in_specs=[
                # x chunk, time-major: per-step access is a dense (BB, Hp) slab.
                pl.BlockSpec((TB, BB, I), lambda b, c: (c, b, 0)),
                # Constant-index weights/bias: fetched into VMEM once.
                pl.BlockSpec((I, Hp), lambda b, c: (0, 0)),
                pl.BlockSpec((Hp, Hp), lambda b, c: (0, 0)),
                pl.BlockSpec((1, Hp), lambda b, c: (0, 0)),
            ],
            out_specs=pl.BlockSpec((TB, BB, Hp), lambda b, c: (c, b, 0)),
            scratch_shapes=[pltpu.VMEM((P, BB, Hp), jnp.float32)],
        ),
        compiler_params=pltpu.CompilerParams(
            # batch chunks are independent (v7x megacore-shardable); the time
            # recurrence must stay sequential.
            dimension_semantics=("parallel", "arbitrary"),
            vmem_limit_bytes=vmem_limit,
        ),
    )(x_t, wih_t, whh_t, bias)

    states = jnp.transpose(states_tm[:T, :B, :H], (1, 0, 2))
    h_last = states_tm[T - 1, :B, :H]
    return states, h_last


def _reference(x, w_ih, w_hh, b_ih, b_hh, *, order, os_factor):
    """Pure-JAX replica of the PyTorch forward (h=None, RNNCell/tanh)."""
    B, T, I = x.shape
    H = w_ih.shape[0]
    lag = jnp.asarray(lagrange_weights(order, os_factor), jnp.float32)
    hi = jax.lax.Precision.HIGHEST
    states = jnp.zeros((B, T, H), jnp.float32)
    prev = jnp.zeros((B, order + 1, H), jnp.float32)
    h = jnp.zeros((B, H), jnp.float32)
    for i in range(T):
        h_read = jnp.einsum("n,bnh->bh", lag, prev)
        h = jnp.tanh(jnp.dot(x[:, i], w_ih.T, precision=hi) + b_ih
                     + jnp.dot(h_read, w_hh.T, precision=hi) + b_hh)
        states = states.at[:, i].set(h)
        prev = prev.at[:, -1].set(h)          # epsilon == 1
        prev = jnp.roll(prev, 1, axis=1)
    return states[..., :H], h


def _run_case(key, B, T, I, H, order, os_factor, atol=3e-5):
    k_x, k_wih, k_whh, k_bih, k_bhh = jax.random.split(key, 5)
    bound = 1.0 / math.sqrt(H)   # torch.nn.RNNCell default init range
    x = jax.random.normal(k_x, (B, T, I), jnp.float32)
    w_ih = jax.random.uniform(k_wih, (H, I), jnp.float32, -bound, bound)
    w_hh = jax.random.uniform(k_whh, (H, H), jnp.float32, -bound, bound)
    b_ih = jax.random.uniform(k_bih, (H,), jnp.float32, -bound, bound)
    b_hh = jax.random.uniform(k_bhh, (H,), jnp.float32, -bound, bound)

    states, h_last = lagrange_interp_rnn(
        x, w_ih, w_hh, b_ih, b_hh, order=order, os_factor=os_factor)
    states = jax.block_until_ready(states)
    h_last = jax.block_until_ready(h_last)

    ref_states, ref_h = _reference(
        x, w_ih, w_hh, b_ih, b_hh, order=order, os_factor=os_factor)

    assert states.shape == (B, T, H) and h_last.shape == (B, H)
    assert jnp.allclose(states, ref_states, atol=atol, rtol=atol)
    assert jnp.allclose(h_last, ref_h, atol=atol, rtol=atol)


if __name__ == "__main__":
    # TODO(synk): only the RNNCell / h=None forward path is implemented
    # (LSTMCell tuple-state, warm-start h, and epsilon != 1 are not).
    key = jax.random.PRNGKey(0)
    k1, k2 = jax.random.split(key)

    # Small deterministic setup matching the module's defaults.
    _run_case(k1, B=2, T=8, I=4, H=32, order=3, os_factor=1.5)
    # Exercise padding / chunking / non-multiple shapes.
    _run_case(k2, B=3, T=20, I=5, H=40, order=2, os_factor=1.25)

    print("KERNEL_OK")
</pallas_src>

<mosaic_0001>
module attributes {stable_mosaic.version = 11 : i64} {
  func.func @_lagrange_rnn_kernel(%arg0: i32, %arg1: i32, %arg2: memref<8x8x4xf32, #tpu.memory_space<vmem>>, %arg3: memref<4x128xf32, #tpu.memory_space<vmem>>, %arg4: memref<128x128xf32, #tpu.memory_space<vmem>>, %arg5: memref<1x128xf32, #tpu.memory_space<vmem>>, %arg6: memref<8x8x128xf32, #tpu.memory_space<vmem>>, %arg7: memref<4x8x128xf32, #tpu.memory_space<vmem>>) attributes {dimension_semantics = [#tpu.dimension_semantics<parallel>, #tpu.dimension_semantics<arbitrary>], iteration_bounds = array<i64: 1, 1>, scalar_prefetch = 0 : i64, scratch_operands = 1 : i64, tpu.core_type = #tpu.core_type<tc>, window_params = [{transform_indices = @transform_0, window_bounds = array<i64: 8, 8, 4>}, {pipeline_mode = #tpu.pipeline_mode<synchronous>, transform_indices = @transform_1, window_bounds = array<i64: 4, 128>}, {pipeline_mode = #tpu.pipeline_mode<synchronous>, transform_indices = @transform_2, window_bounds = array<i64: 128, 128>}, {pipeline_mode = #tpu.pipeline_mode<synchronous>, transform_indices = @transform_3, window_bounds = array<i64: 1, 128>}, {transform_indices = @transform_4, window_bounds = array<i64: 8, 8, 128>}]} {
    %c0_i32 = arith.constant 0 : i32
    %0 = arith.cmpi eq, %arg1, %c0_i32 : i32
    %1 = arith.extui %0 : i1 to i32
    %c0_i32_0 = arith.constant 0 : i32
    %2 = arith.cmpi ne, %1, %c0_i32_0 : i32
    scf.if %2 {
      %cst = arith.constant 0.000000e+00 : f32
      %7 = vector.broadcast %cst : f32 to vector<4x8x128xf32>
      %c0_8 = arith.constant 0 : index
      %c0_9 = arith.constant 0 : index
      %c0_10 = arith.constant 0 : index
      %8 = vector.load %arg7[%c0_8, %c0_9, %c0_10] : memref<4x8x128xf32, #tpu.memory_space<vmem>>, vector<4x8x128xf32>
      tpu.vector_store %arg7[%c0_8, %c0_9, %c0_10], %7 {strides = array<i32>} : memref<4x8x128xf32, #tpu.memory_space<vmem>>, vector<4x8x128xf32>,
    } else {
    }
    %c0 = arith.constant 0 : index
    %c0_1 = arith.constant 0 : index
    %3 = vector.load %arg3[%c0, %c0_1] : memref<4x128xf32, #tpu.memory_space<vmem>>, vector<4x128xf32>
    %c0_2 = arith.constant 0 : index
    %c0_3 = arith.constant 0 : index
    %4 = vector.load %arg4[%c0_2, %c0_3] : memref<128x128xf32, #tpu.memory_space<vmem>>, vector<128x128xf32>
    %c0_4 = arith.constant 0 : index
    %c0_5 = arith.constant 0 : index
    %5 = vector.load %arg5[%c0_4, %c0_5] : memref<1x128xf32, #tpu.memory_space<vmem>>, vector<1x128xf32>
    %c0_i32_6 = arith.constant 0 : i32
    %c2_i32 = arith.constant 2 : i32
    %6 = arith.addi %c0_i32_6, %c2_i32 : i32
    %c1_i32 = arith.constant 1 : i32
    scf.for %arg8 = %c0_i32_6 to %6 step %c1_i32  : i32 {
      %c4_i32 = arith.constant 4 : i32
      %7 = arith.muli %arg8, %c4_i32 : i32
      %8 = tpu.assume_multiple %7, 4 : i32
      %9 = arith.index_cast %8 : i32 to index
      %c0_8 = arith.constant 0 : index
      %c0_9 = arith.constant 0 : index
      %10 = vector.load %arg2[%9, %c0_8, %c0_9] : memref<8x8x4xf32, #tpu.memory_space<vmem>>, vector<4x8x4xf32>
      %11 = vector.shape_cast %10 : vector<4x8x4xf32> to vector<32x4xf32>
      %cst = arith.constant dense<0.000000e+00> : vector<32x128xf32>
      %12 = tpu.matmul %11, %3, %cst {dimension_numbers = #tpu.dot_dimension_numbers<[1], [0], [0], [1], [0, 0, 1, 1], [], []>} : vector<32x4xf32>, vector<4x128xf32>, vector<32x128xf32> -> vector<32x128xf32>
      %13 = vector.broadcast %5 : vector<1x128xf32> to vector<32x128xf32>
      %14 = arith.addf %12, %13 : vector<32x128xf32>
      %15 = vector.shape_cast %14 : vector<32x128xf32> to vector<4x8x128xf32>
      %c3 = arith.constant 3 : index
      %c0_10 = arith.constant 0 : index
      %c0_11 = arith.constant 0 : index
      %16 = vector.load %arg7[%c3, %c0_10, %c0_11] : memref<4x8x128xf32, #tpu.memory_space<vmem>>, vector<1x8x128xf32>
      %17 = vector.shape_cast %16 : vector<1x8x128xf32> to vector<8x128xf32>
      %cst_12 = arith.constant 3.125000e-01 : f32
      %18 = vector.broadcast %cst_12 : f32 to vector<8x128xf32>
      %19 = arith.mulf %18, %17 : vector<8x128xf32>
      %c2 = arith.constant 2 : index
      %c0_13 = arith.constant 0 : index
      %c0_14 = arith.constant 0 : index
      %20 = vector.load %arg7[%c2, %c0_13, %c0_14] : memref<4x8x128xf32, #tpu.memory_space<vmem>>, vector<1x8x128xf32>
      %21 = vector.shape_cast %20 : vector<1x8x128xf32> to vector<8x128xf32>
      %cst_15 = arith.constant 9.375000e-01 : f32
      %22 = vector.broadcast %cst_15 : f32 to vector<8x128xf32>
      %23 = arith.mulf %22, %21 : vector<8x128xf32>
      %24 = arith.addf %19, %23 : vector<8x128xf32>
      %c1 = arith.constant 1 : index
      %c0_16 = arith.constant 0 : index
      %c0_17 = arith.constant 0 : index
      %25 = vector.load %arg7[%c1, %c0_16, %c0_17] : memref<4x8x128xf32, #tpu.memory_space<vmem>>, vector<1x8x128xf32>
      %26 = vector.shape_cast %25 : vector<1x8x128xf32> to vector<8x128xf32>
      %cst_18 = arith.constant -3.125000e-01 : f32
      %27 = vector.broadcast %cst_18 : f32 to vector<8x128xf32>
      %28 = arith.mulf %27, %26 : vector<8x128xf32>
      %29 = arith.addf %24, %28 : vector<8x128xf32>
      %c0_19 = arith.constant 0 : index
      %c0_20 = arith.constant 0 : index
      %c0_21 = arith.constant 0 : index
      %30 = vector.load %arg7[%c0_19, %c0_20, %c0_21] : memref<4x8x128xf32, #tpu.memory_space<vmem>>, vector<1x8x128xf32>
      %31 = vector.shape_cast %30 : vector<1x8x128xf32> to vector<8x128xf32>
      %cst_22 = arith.constant 6.250000e-02 : f32
      %32 = vector.broadcast %cst_22 : f32 to vector<8x128xf32>
      %33 = arith.mulf %32, %31 : vector<8x128xf32>
      %34 = arith.addf %29, %33 : vector<8x128xf32>
      %cst_23 = arith.constant dense<0.000000e+00> : vector<8x128xf32>
      %35 = tpu.matmul %34, %4, %cst_23 {dimension_numbers = #tpu.dot_dimension_numbers<[1], [0], [0], [1], [0, 0, 1, 1], [], []>} : vector<8x128xf32>, vector<128x128xf32>, vector<8x128xf32> -> vector<8x128xf32>
      %36 = vector.extract_strided_slice %15 {offsets = [0, 0, 0], sizes = [1, 8, 128], strides = [1, 1, 1]} : vector<4x8x128xf32> to vector<1x8x128xf32>
      %37 = vector.shape_cast %36 : vector<1x8x128xf32> to vector<8x128xf32>
      %38 = arith.addf %37, %35 : vector<8x128xf32>
      %39 = math.tanh %38 : vector<8x128xf32>
      %c0_i32_24 = arith.constant 0 : i32
      %40 = arith.addi %8, %c0_i32_24 : i32
      %41 = arith.index_cast %40 : i32 to index
      %c0_25 = arith.constant 0 : index
      %c0_26 = arith.constant 0 : index
      %42 = vector.load %arg6[%41, %c0_25, %c0_26] : memref<8x8x128xf32, #tpu.memory_space<vmem>>, vector<1x8x128xf32>
      %43 = vector.shape_cast %42 : vector<1x8x128xf32> to vector<8x128xf32>
      %44 = vector.shape_cast %39 : vector<8x128xf32> to vector<1x8x128xf32>
      tpu.vector_store %arg6[%41, %c0_25, %c0_26], %44 {strides = array<i32>} : memref<8x8x128xf32, #tpu.memory_space<vmem>>, vector<1x8x128xf32>,
      %c0_27 = arith.constant 0 : index
      %c0_28 = arith.constant 0 : index
      %c0_29 = arith.constant 0 : index
      %45 = vector.load %arg7[%c0_27, %c0_28, %c0_29] : memref<4x8x128xf32, #tpu.memory_space<vmem>>, vector<1x8x128xf32>
      %46 = vector.shape_cast %45 : vector<1x8x128xf32> to vector<8x128xf32>
      %47 = vector.shape_cast %39 : vector<8x128xf32> to vector<1x8x128xf32>
      tpu.vector_store %arg7[%c0_27, %c0_28, %c0_29], %47 {strides = array<i32>} : memref<4x8x128xf32, #tpu.memory_space<vmem>>, vector<1x8x128xf32>,
      %c0_30 = arith.constant 0 : index
      %c0_31 = arith.constant 0 : index
      %c0_32 = arith.constant 0 : index
      %48 = vector.load %arg7[%c0_30, %c0_31, %c0_32] : memref<4x8x128xf32, #tpu.memory_space<vmem>>, vector<1x8x128xf32>
      %49 = vector.shape_cast %48 : vector<1x8x128xf32> to vector<8x128xf32>
      %cst_33 = arith.constant 3.125000e-01 : f32
      %50 = vector.broadcast %cst_33 : f32 to vector<8x128xf32>
      %51 = arith.mulf %50, %49 : vector<8x128xf32>
      %c3_34 = arith.constant 3 : index
      %c0_35 = arith.constant 0 : index
      %c0_36 = arith.constant 0 : index
      %52 = vector.load %arg7[%c3_34, %c0_35, %c0_36] : memref<4x8x128xf32, #tpu.memory_space<vmem>>, vector<1x8x128xf32>
      %53 = vector.shape_cast %52 : vector<1x8x128xf32> to vector<8x128xf32>
      %cst_37 = arith.constant 9.375000e-01 : f32
      %54 = vector.broadcast %cst_37 : f32 to vector<8x128xf32>
      %55 = arith.mulf %54, %53 : vector<8x128xf32>
      %56 = arith.addf %51, %55 : vector<8x128xf32>
      %c2_38 = arith.constant 2 : index
      %c0_39 = arith.constant 0 : index
      %c0_40 = arith.constant 0 : index
      %57 = vector.load %arg7[%c2_38, %c0_39, %c0_40] : memref<4x8x128xf32, #tpu.memory_space<vmem>>, vector<1x8x128xf32>
      %58 = vector.shape_cast %57 : vector<1x8x128xf32> to vector<8x128xf32>
      %cst_41 = arith.constant -3.125000e-01 : f32
      %59 = vector.broadcast %cst_41 : f32 to vector<8x128xf32>
      %60 = arith.mulf %59, %58 : vector<8x128xf32>
      %61 = arith.addf %56, %60 : vector<8x128xf32>
      %c1_42 = arith.constant 1 : index
      %c0_43 = arith.constant 0 : index
      %c0_44 = arith.constant 0 : index
      %62 = vector.load %arg7[%c1_42, %c0_43, %c0_44] : memref<4x8x128xf32, #tpu.memory_space<vmem>>, vector<1x8x128xf32>
      %63 = vector.shape_cast %62 : vector<1x8x128xf32> to vector<8x128xf32>
      %cst_45 = arith.constant 6.250000e-02 : f32
      %64 = vector.broadcast %cst_45 : f32 to vector<8x128xf32>
      %65 = arith.mulf %64, %63 : vector<8x128xf32>
      %66 = arith.addf %61, %65 : vector<8x128xf32>
      %cst_46 = arith.constant dense<0.000000e+00> : vector<8x128xf32>
      %67 = tpu.matmul %66, %4, %cst_46 {dimension_numbers = #tpu.dot_dimension_numbers<[1], [0], [0], [1], [0, 0, 1, 1], [], []>} : vector<8x128xf32>, vector<128x128xf32>, vector<8x128xf32> -> vector<8x128xf32>
      %68 = vector.extract_strided_slice %15 {offsets = [1, 0, 0], sizes = [1, 8, 128], strides = [1, 1, 1]} : vector<4x8x128xf32> to vector<1x8x128xf32>
      %69 = vector.shape_cast %68 : vector<1x8x128xf32> to vector<8x128xf32>
      %70 = arith.addf %69, %67 : vector<8x128xf32>
      %71 = math.tanh %70 : vector<8x128xf32>
      %c1_i32_47 = arith.constant 1 : i32
      %72 = arith.addi %8, %c1_i32_47 : i32
      %73 = arith.index_cast %72 : i32 to index
      %c0_48 = arith.constant 0 : index
      %c0_49 = arith.constant 0 : index
      %74 = vector.load %arg6[%73, %c0_48, %c0_49] : memref<8x8x128xf32, #tpu.memory_space<vmem>>, vector<1x8x128xf32>
      %75 = vector.shape_cast %74 : vector<1x8x128xf32> to vector<8x128xf32>
      %76 = vector.shape_cast %71 : vector<8x128xf32> to vector<1x8x128xf32>
      tpu.vector_store %arg6[%73, %c0_48, %c0_49], %76 {strides = array<i32>} : memref<8x8x128xf32, #tpu.memory_space<vmem>>, vector<1x8x128xf32>,
      %c1_50 = arith.constant 1 : index
      %c0_51 = arith.constant 0 : index
      %c0_52 = arith.constant 0 : index
      %77 = vector.load %arg7[%c1_50, %c0_51, %c0_52] : memref<4x8x128xf32, #tpu.memory_space<vmem>>, vector<1x8x128xf32>
      %78 = vector.shape_cast %77 : vector<1x8x128xf32> to vector<8x128xf32>
      %79 = vector.shape_cast %71 : vector<8x128xf32> to vector<1x8x128xf32>
      tpu.vector_store %arg7[%c1_50, %c0_51, %c0_52], %79 {strides = array<i32>} : memref<4x8x128xf32, #tpu.memory_space<vmem>>, vector<1x8x128xf32>,
      %c1_53 = arith.constant 1 : index
      %c0_54 = arith.constant 0 : index
      %c0_55 = arith.constant 0 : index
      %80 = vector.load %arg7[%c1_53, %c0_54, %c0_55] : memref<4x8x128xf32, #tpu.memory_space<vmem>>, vector<1x8x128xf32>
      %81 = vector.shape_cast %80 : vector<1x8x128xf32> to vector<8x128xf32>
      %cst_56 = arith.constant 3.125000e-01 : f32
      %82 = vector.broadcast %cst_56 : f32 to vector<8x128xf32>
      %83 = arith.mulf %82, %81 : vector<8x128xf32>
      %c0_57 = arith.constant 0 : index
      %c0_58 = arith.constant 0 : index
      %c0_59 = arith.constant 0 : index
      %84 = vector.load %arg7[%c0_57, %c0_58, %c0_59] : memref<4x8x128xf32, #tpu.memory_space<vmem>>, vector<1x8x128xf32>
      %85 = vector.shape_cast %84 : vector<1x8x128xf32> to vector<8x128xf32>
      %cst_60 = arith.constant 9.375000e-01 : f32
      %86 = vector.broadcast %cst_60 : f32 to vector<8x128xf32>
      %87 = arith.mulf %86, %85 : vector<8x128xf32>
      %88 = arith.addf %83, %87 : vector<8x128xf32>
      %c3_61 = arith.constant 3 : index
      %c0_62 = arith.constant 0 : index
      %c0_63 = arith.constant 0 : index
      %89 = vector.load %arg7[%c3_61, %c0_62, %c0_63] : memref<4x8x128xf32, #tpu.memory_space<vmem>>, vector<1x8x128xf32>
      %90 = vector.shape_cast %89 : vector<1x8x128xf32> to vector<8x128xf32>
      %cst_64 = arith.constant -3.125000e-01 : f32
      %91 = vector.broadcast %cst_64 : f32 to vector<8x128xf32>
      %92 = arith.mulf %91, %90 : vector<8x128xf32>
      %93 = arith.addf %88, %92 : vector<8x128xf32>
      %c2_65 = arith.constant 2 : index
      %c0_66 = arith.constant 0 : index
      %c0_67 = arith.constant 0 : index
      %94 = vector.load %arg7[%c2_65, %c0_66, %c0_67] : memref<4x8x128xf32, #tpu.memory_space<vmem>>, vector<1x8x128xf32>
      %95 = vector.shape_cast %94 : vector<1x8x128xf32> to vector<8x128xf32>
      %cst_68 = arith.constant 6.250000e-02 : f32
      %96 = vector.broadcast %cst_68 : f32 to vector<8x128xf32>
      %97 = arith.mulf %96, %95 : vector<8x128xf32>
      %98 = arith.addf %93, %97 : vector<8x128xf32>
      %cst_69 = arith.constant dense<0.000000e+00> : vector<8x128xf32>
      %99 = tpu.matmul %98, %4, %cst_69 {dimension_numbers = #tpu.dot_dimension_numbers<[1], [0], [0], [1], [0, 0, 1, 1], [], []>} : vector<8x128xf32>, vector<128x128xf32>, vector<8x128xf32> -> vector<8x128xf32>
      %100 = vector.extract_strided_slice %15 {offsets = [2, 0, 0], sizes = [1, 8, 128], strides = [1, 1, 1]} : vector<4x8x128xf32> to vector<1x8x128xf32>
      %101 = vector.shape_cast %100 : vector<1x8x128xf32> to vector<8x128xf32>
      %102 = arith.addf %101, %99 : vector<8x128xf32>
      %103 = math.tanh %102 : vector<8x128xf32>
      %c2_i32_70 = arith.constant 2 : i32
      %104 = arith.addi %8, %c2_i32_70 : i32
      %105 = arith.index_cast %104 : i32 to index
      %c0_71 = arith.constant 0 : index
      %c0_72 = arith.constant 0 : index
      %106 = vector.load %arg6[%105, %c0_71, %c0_72] : memref<8x8x128xf32, #tpu.memory_space<vmem>>, vector<1x8x128xf32>
      %107 = vector.shape_cast %106 : vector<1x8x128xf32> to vector<8x128xf32>
      %108 = vector.shape_cast %103 : vector<8x128xf32> to vector<1x8x128xf32>
      tpu.vector_store %arg6[%105, %c0_71, %c0_72], %108 {strides = array<i32>} : memref<8x8x128xf32, #tpu.memory_space<vmem>>, vector<1x8x128xf32>,
      %c2_73 = arith.constant 2 : index
      %c0_74 = arith.constant 0 : index
      %c0_75 = arith.constant 0 : index
      %109 = vector.load %arg7[%c2_73, %c0_74, %c0_75] : memref<4x8x128xf32, #tpu.memory_space<vmem>>, vector<1x8x128xf32>
      %110 = vector.shape_cast %109 : vector<1x8x128xf32> to vector<8x128xf32>
      %111 = vector.shape_cast %103 : vector<8x128xf32> to vector<1x8x128xf32>
      tpu.vector_store %arg7[%c2_73, %c0_74, %c0_75], %111 {strides = array<i32>} : memref<4x8x128xf32, #tpu.memory_space<vmem>>, vector<1x8x128xf32>,
      %c2_76 = arith.constant 2 : index
      %c0_77 = arith.constant 0 : index
      %c0_78 = arith.constant 0 : index
      %112 = vector.load %arg7[%c2_76, %c0_77, %c0_78] : memref<4x8x128xf32, #tpu.memory_space<vmem>>, vector<1x8x128xf32>
      %113 = vector.shape_cast %112 : vector<1x8x128xf32> to vector<8x128xf32>
      %cst_79 = arith.constant 3.125000e-01 : f32
      %114 = vector.broadcast %cst_79 : f32 to vector<8x128xf32>
      %115 = arith.mulf %114, %113 : vector<8x128xf32>
      %c1_80 = arith.constant 1 : index
      %c0_81 = arith.constant 0 : index
      %c0_82 = arith.constant 0 : index
      %116 = vector.load %arg7[%c1_80, %c0_81, %c0_82] : memref<4x8x128xf32, #tpu.memory_space<vmem>>, vector<1x8x128xf32>
      %117 = vector.shape_cast %116 : vector<1x8x128xf32> to vector<8x128xf32>
      %cst_83 = arith.constant 9.375000e-01 : f32
      %118 = vector.broadcast %cst_83 : f32 to vector<8x128xf32>
      %119 = arith.mulf %118, %117 : vector<8x128xf32>
      %120 = arith.addf %115, %119 : vector<8x128xf32>
      %c0_84 = arith.constant 0 : index
      %c0_85 = arith.constant 0 : index
      %c0_86 = arith.constant 0 : index
      %121 = vector.load %arg7[%c0_84, %c0_85, %c0_86] : memref<4x8x128xf32, #tpu.memory_space<vmem>>, vector<1x8x128xf32>
      %122 = vector.shape_cast %121 : vector<1x8x128xf32> to vector<8x128xf32>
      %cst_87 = arith.constant -3.125000e-01 : f32
      %123 = vector.broadcast %cst_87 : f32 to vector<8x128xf32>
      %124 = arith.mulf %123, %122 : vector<8x128xf32>
      %125 = arith.addf %120, %124 : vector<8x128xf32>
      %c3_88 = arith.constant 3 : index
      %c0_89 = arith.constant 0 : index
      %c0_90 = arith.constant 0 : index
      %126 = vector.load %arg7[%c3_88, %c0_89, %c0_90] : memref<4x8x128xf32, #tpu.memory_space<vmem>>, vector<1x8x128xf32>
      %127 = vector.shape_cast %126 : vector<1x8x128xf32> to vector<8x128xf32>
      %cst_91 = arith.constant 6.250000e-02 : f32
      %128 = vector.broadcast %cst_91 : f32 to vector<8x128xf32>
      %129 = arith.mulf %128, %127 : vector<8x128xf32>
      %130 = arith.addf %125, %129 : vector<8x128xf32>
      %cst_92 = arith.constant dense<0.000000e+00> : vector<8x128xf32>
      %131 = tpu.matmul %130, %4, %cst_92 {dimension_numbers = #tpu.dot_dimension_numbers<[1], [0], [0], [1], [0, 0, 1, 1], [], []>} : vector<8x128xf32>, vector<128x128xf32>, vector<8x128xf32> -> vector<8x128xf32>
      %132 = vector.extract_strided_slice %15 {offsets = [3, 0, 0], sizes = [1, 8, 128], strides = [1, 1, 1]} : vector<4x8x128xf32> to vector<1x8x128xf32>
      %133 = vector.shape_cast %132 : vector<1x8x128xf32> to vector<8x128xf32>
      %134 = arith.addf %133, %131 : vector<8x128xf32>
      %135 = math.tanh %134 : vector<8x128xf32>
      %c3_i32 = arith.constant 3 : i32
      %136 = arith.addi %8, %c3_i32 : i32
      %137 = arith.index_cast %136 : i32 to index
      %c0_93 = arith.constant 0 : index
      %c0_94 = arith.constant 0 : index
      %138 = vector.load %arg6[%137, %c0_93, %c0_94] : memref<8x8x128xf32, #tpu.memory_space<vmem>>, vector<1x8x128xf32>
      %139 = vector.shape_cast %138 : vector<1x8x128xf32> to vector<8x128xf32>
      %140 = vector.shape_cast %135 : vector<8x128xf32> to vector<1x8x128xf32>
      tpu.vector_store %arg6[%137, %c0_93, %c0_94], %140 {strides = array<i32>} : memref<8x8x128xf32, #tpu.memory_space<vmem>>, vector<1x8x128xf32>,
      %c3_95 = arith.constant 3 : index
      %c0_96 = arith.constant 0 : index
      %c0_97 = arith.constant 0 : index
      %141 = vector.load %arg7[%c3_95, %c0_96, %c0_97] : memref<4x8x128xf32, #tpu.memory_space<vmem>>, vector<1x8x128xf32>
      %142 = vector.shape_cast %141 : vector<1x8x128xf32> to vector<8x128xf32>
      %143 = vector.shape_cast %135 : vector<8x128xf32> to vector<1x8x128xf32>
      tpu.vector_store %arg7[%c3_95, %c0_96, %c0_97], %143 {strides = array<i32>} : memref<4x8x128xf32, #tpu.memory_space<vmem>>, vector<1x8x128xf32>,
    }
    %c2_i32_7 = arith.constant 2 : i32
    return
  }
  func.func @transform_0(%arg0: i32, %arg1: i32) -> (i32, i32, i32) {
    %c0_i32 = arith.constant 0 : i32
    %c0_i32_0 = arith.constant 0 : i32
    return %arg1, %arg0, %c0_i32 : i32, i32, i32
  }
  func.func @transform_1(%arg0: i32, %arg1: i32) -> (i32, i32) {
    %c0_i32 = arith.constant 0 : i32
    %c0_i32_0 = arith.constant 0 : i32
    %c0_i32_1 = arith.constant 0 : i32
    return %c0_i32, %c0_i32_0 : i32, i32
  }
  func.func @transform_2(%arg0: i32, %arg1: i32) -> (i32, i32) {
    %c0_i32 = arith.constant 0 : i32
    %c0_i32_0 = arith.constant 0 : i32
    %c0_i32_1 = arith.constant 0 : i32
    return %c0_i32, %c0_i32_0 : i32, i32
  }
  func.func @transform_3(%arg0: i32, %arg1: i32) -> (i32, i32) {
    %c0_i32 = arith.constant 0 : i32
    %c0_i32_0 = arith.constant 0 : i32
    %c0_i32_1 = arith.constant 0 : i32
    return %c0_i32, %c0_i32_0 : i32, i32
  }
  func.func @transform_4(%arg0: i32, %arg1: i32) -> (i32, i32, i32) {
    %c0_i32 = arith.constant 0 : i32
    %c0_i32_0 = arith.constant 0 : i32
    return %arg1, %arg0, %c0_i32 : i32, i32, i32
  }
}

</mosaic_0001>

<bundles_post_ra>
// kernel: tpu_custom_call.1
= control target key start
LH: loop header
LB: loop body
LE: loop exit
PB: predicated region body
PF: predicated region fallthrough
CT: control target
= control target key end

     0   :  { %9 = vsyncpa [#allocation4], 0  ;;  %s1169_s0 = inlined_call_operand.vmem [shape: f32[8,8,4], index: 0, kind: input, shape index: {}]   ;;  %s1170_s1 = inlined_call_operand.vmem [shape: f32[4,128], index: 1, kind: input, shape index: {}]   ;;  %s1171_s2 = inlined_call_operand.hbm [shape: f32[128,128], index: 2, kind: input, shape index: {}]   ;;  %s1172_s3 = inlined_call_operand.vmem [shape: f32[1,128], index: 3, kind: input, shape index: {}]   ;;  %s1173_s4 = inlined_call_operand.hbm [shape: f32[8,8,128], index: 4, kind: output, shape index: {}]  }
   0x1   :  { %10 = vsyncpa [#allocation5], 0  ;;  %s887_s15 = smov [#allocation3]  }
   0x2   :  { %s20_s16 = sshll.u32 %s887_s15, 4  ;;  %s21_s16 = int_to_ptr.vmem [resolvable:$true] %s20_s16 }
   0x3   :  { %s843_s17 = scalar_lea.vmem %s21_s16, 2048  ;;  %p848_p1 = scmp.lt.s32.totalorder %s21_s16, %s21_s16 }
   0x4   :  { %p844_p0 = scmp.ne.s32.totalorder %s21_s16, %s843_s17  ;;  %p849_p2 = scmp.lt.s32.totalorder %s843_s17, %s843_s17 }
   0x6   :  { %p850_p3 = por %p849_p2, %p848_p1 }
   0x8   :  { %p851_p4 = pnand %p850_p3, %p844_p0 }
   0xa   :  { %854 = shalt.err (!%p851_p4)
}
   0xb   :  { %s888_s18 = smov 128   ;;  %s889_s19 = smov 8  }
   0xc   :  { %26 = dma.hbm_to_vmem [thread:$0]  %s1171_s2, 2048, %s21_s16, [#allocation4], %s888_s18, %s888_s18, %s889_s19  }
   0xd   :  { %879 = dma.done.wait [#allocation4], 2048  }
   0xe   :  { %880 = vsyncadd [#allocation4], 4294965248  ;;  %v890_v0 = vmov 0.0   ;;  %v928_v1 = vld [vmem:[%s1170_s1] sm:$0xf]  ;;  %v932_v3 = vld [vmem:[#allocation3 + $0x8] sm:$0xff] }
   0xf   :  { %36 = vst [vmem:[#allocation2 + $0x10] sm:$0xff] %v890_v0  ;;  %37 = vst [vmem:[#allocation2] sm:$0xff] %v890_v0  ;;  %v930_v2 = vld [vmem:[#allocation3] sm:$0xff]  ;;  %v934_v4 = vld [vmem:[#allocation3 + $0x10] sm:$0xff]  ;;  %s967_s24 = smov 0  }
  0x10   :  { %38 = vst [vmem:[#allocation2 + $0x18] sm:$0xff] %v890_v0  ;;  %39 = vst [vmem:[#allocation2 + $0x8] sm:$0xff] %v890_v0  ;;  %v936_v5 = vld [vmem:[#allocation3 + $0x18] sm:$0xff]  ;;  %v938_v6 = vld [vmem:[#allocation3 + $0x20] sm:$0xff] }
  0x11   :  { %v940_v7 = vld [vmem:[#allocation3 + $0x28] sm:$0xff]  ;;  %v942_v8 = vld [vmem:[#allocation3 + $0x30] sm:$0xff]  ;;  %v944_v9 = vld [vmem:[#allocation3 + $0x38] sm:$0xff] }
  0x12   :  { %v946_v10 = vld [vmem:[#allocation3 + $0x40] sm:$0xff]  ;;  %v948_v11 = vld [vmem:[#allocation3 + $0x48] sm:$0xff]  ;;  %v950_v12 = vld [vmem:[#allocation3 + $0x50] sm:$0xff] }
  0x13   :  { %v952_v13 = vld [vmem:[#allocation3 + $0x58] sm:$0xff]  ;;  %v954_v14 = vld [vmem:[#allocation3 + $0x60] sm:$0xff]  ;;  %v956_v15 = vld [vmem:[#allocation3 + $0x68] sm:$0xff] }
  0x14   :  { %v958_v16 = vld [vmem:[#allocation3 + $0x70] sm:$0xff]  ;;  %v960_v17 = vld [vmem:[#allocation3 + $0x78] sm:$0xff]  ;;  %v965_v18 = vld [vmem:[%s1172_s3] ss:$0 sm:$0xff] }
  0x15 LB: > { %vm90_vm0 = vcmask 1043456   ;;  %v891_v19 = vmov 0.0   ;;  %s587_s3 = sshll.u32 %s885_s24, 5  ;;  %vm77_vm1 = vcmask 31744   ;;  %vm892_vm2 = vmmov 0   ;;  %s63_s24 = sadd.s32 1, %s885_s24   ;;  %s885_s24 = sphi %s967_s24, %s63_s24  }
  0x16   : > { %672 = vmatprep.subr.mxu1 %v891_v19  ;;  %664 = vmatprep.subr.msk.mxu0 %vm90_vm0, %v928_v1  ;;  %s983_s27 = scalar_lea.vmem %s1169_s0, %s587_s3  ;;  %v1024_v26 = vld [vmem:[#allocation2] sm:$0xff]  ;;  %v190_v29 = vld [vmem:[#allocation2 + $0x10] sm:$0xff]  ;;  %s1108_s28 = scalar_lea.vmem [#allocation6], %s587_s3 }
  0x17   : > { %673 = vmatpush3.msra.mxu1 %v960_v17  ;;  %665 = vmatpush3.msk.msra.mxu0 %vm90_vm0, %v928_v1  ;;  %v67_v20 = vld [vmem:[%s983_s27] sm:$0xff]  ;;  %v68_v21 = vld [vmem:[%s983_s27 + $0x8] sm:$0xff]  ;;  %v1012_v23 = vld [vmem:[#allocation2 + $0x18] sm:$0xff]  ;;  %v188_v28 = vmul.f32 -0.3125, %v1024_v26  ;;  %v191_v31 = vmul.f32 0.0625, %v190_v29  ;;  %v277_v46 = vmul.f32 0.0625, %v1024_v26 }
  0x18   : > { %674 = vmatprep.subr.mxu1 %v891_v19  ;;  %704 = vmatprep.mubr.msk.f32.mxu1 %vm892_vm2, %v891_v19  ;;  %v1010_v22 = vld [vmem:[#allocation2 + $0x8] sm:$0xff]  ;;  %v184_v25 = vmul.f32 0.9375, %v1012_v23  ;;  %v69_v33 = vld [vmem:[%s983_s27 + $0x10] sm:$0xff]  ;;  %v70_v34 = vld [vmem:[%s983_s27 + $0x18] sm:$0xff]  ;;  %v274_v44 = vmul.f32 -0.3125, %v1012_v23  ;;  %v365_v60 = vmul.f32 0.0625, %v1012_v23 }
  0x19   : > { %675 = vmatpush3.msra.mxu1 %v958_v16  ;;  %707 = vmatprep.subr.mxu0 %v891_v19  ;;  %v181_v24 = vmul.f32 0.3125, %v1010_v22  ;;  %v271_v41 = vmul.f32 0.9375, %v1010_v22  ;;  %v362_v58 = vmul.f32 -0.3125, %v1010_v22  ;;  %v453_v23 = vmul.f32 0.0625, %v1010_v22  ;;  %p60_p5 = scmp.ge.s32.totalorder %s63_s24, 2  }
  0x1a   : > { %676 = vmatprep.subr.mxu1 %v891_v19  ;;  %666 = vmatprep.mubr.msk.f32.mxu0 %vm77_vm1, %v67_v20  ;;  %s893_s29 = smov (%p60_p5), [#allocation6]  }
  0x1b   : > { %677 = vmatpush3.msra.mxu1 %v956_v15  ;;  %667 = vmatmul.mubr.msk.f32.vlgmr.msra.gmra.mxu0 %vm77_vm1, %v68_v21  ;;  %v185_v27 = vadd.f32 %v184_v25, %v181_v24  ;;  %s537_s30 = sshll.u32 (%p60_p5), %s893_s29, 4  ;;  %s538_s30 = int_to_ptr.vmem [resolvable:$true] %s537_s30 }
  0x1c   : > { %678 = vmatprep.subr.mxu1 %v891_v19  ;;  %708 = vmatpush3.msra.mxu0 %v960_v17  ;;  %s855_s5 = scalar_lea.vmem (%p60_p5), %s538_s30, 1024  ;;  %p860_p7 = scmp.lt.s32.totalorder (%p60_p5), %s538_s30, %s538_s30 }
  0x1d   : > { %679 = vmatpush3.msra.mxu1 %v954_v14  ;;  %709 = vmatprep.subr.mxu0 %v891_v19  ;;  %v189_v30 = vadd.f32 %v188_v28, %v185_v27  ;;  %p856_p6 = scmp.ne.s32.totalorder (%p60_p5), %s538_s30, %s855_s5  ;;  %p861_p8 = scmp.lt.s32.totalorder (%p60_p5), %s855_s5, %s855_s5 }
  0x1e   : > { %680 = vmatprep.subr.mxu1 %v891_v19  ;;  %710 = vmatpush3.msra.mxu0 %v958_v16 }
  0x1f   : > { %681 = vmatpush3.msra.mxu1 %v952_v13  ;;  %711 = vmatprep.subr.mxu0 %v891_v19  ;;  %v192_v32 = vadd.f32 %v191_v31, %v189_v30  ;;  %p862_p9 = por (%p60_p5), %p861_p8, %p860_p7 }
  0x20   : > { %682 = vmatprep.subr.mxu1 %v891_v19  ;;  %712 = vmatpush3.msra.mxu0 %v956_v15 }
  0x21   : > { %683 = vmatpush3.msra.mxu1 %v950_v12  ;;  %713 = vmatprep.subr.mxu0 %v891_v19  ;;  %p863_p10 = pnand (%p60_p5), %p862_p9, %p856_p6 }
  0x22   : > { %684 = vmatprep.subr.mxu1 %v891_v19  ;;  %714 = vmatpush3.msra.mxu0 %v954_v14 }
  0x23   : > { %685 = vmatpush3.msra.mxu1 %v948_v11  ;;  %715 = vmatprep.subr.mxu0 %v891_v19 }
  0x24   : > { %686 = vmatprep.subr.mxu1 %v891_v19  ;;  %716 = vmatpush3.msra.mxu0 %v952_v13 }
  0x25   : > { %687 = vmatpush3.msra.mxu1 %v946_v10  ;;  %717 = vmatprep.subr.mxu0 %v891_v19 }
  0x26   : > { %688 = vmatprep.subr.mxu1 %v891_v19  ;;  %718 = vmatpush3.msra.mxu0 %v950_v12 }
  0x27   : > { %689 = vmatpush3.msra.mxu1 %v944_v9  ;;  %719 = vmatprep.subr.mxu0 %v891_v19 }
  0x28   : > { %690 = vmatprep.subr.mxu1 %v891_v19  ;;  %720 = vmatpush3.msra.mxu0 %v948_v11 }
  0x29   : > { %691 = vmatpush3.msra.mxu1 %v942_v8  ;;  %721 = vmatprep.subr.mxu0 %v891_v19 }
  0x2a   : > { %692 = vmatprep.subr.mxu1 %v891_v19  ;;  %722 = vmatpush3.msra.mxu0 %v946_v10 }
  0x2b   : > { %693 = vmatpush3.msra.mxu1 %v940_v7  ;;  %723 = vmatprep.subr.mxu0 %v891_v19 }
  0x2c   : > { %694 = vmatprep.subr.mxu1 %v891_v19  ;;  %724 = vmatpush3.msra.mxu0 %v944_v9 }
  0x2d   : > { %695 = vmatpush3.msra.mxu1 %v938_v6  ;;  %725 = vmatprep.subr.mxu0 %v891_v19 }
  0x2e   : > { %696 = vmatprep.subr.mxu1 %v891_v19  ;;  %726 = vmatpush3.msra.mxu0 %v942_v8 }
  0x2f   : > { %697 = vmatpush3.msra.mxu1 %v936_v5  ;;  %727 = vmatprep.subr.mxu0 %v891_v19 }
  0x30   : > { %698 = vmatprep.subr.mxu1 %v891_v19  ;;  %728 = vmatpush3.msra.mxu0 %v940_v7 }
  0x31   : > { %699 = vmatpush3.msra.mxu1 %v934_v4  ;;  %729 = vmatprep.subr.mxu0 %v891_v19 }
  0x32   : > { %700 = vmatprep.subr.mxu1 %v891_v19  ;;  %730 = vmatpush3.msra.mxu0 %v938_v6 }
  0x33   : > { %701 = vmatpush3.msra.mxu1 %v932_v3  ;;  %731 = vmatprep.subr.mxu0 %v891_v19 }
  0x34   : > { %702 = vmatprep.subr.mxu1 %v891_v19  ;;  %732 = vmatpush3.msra.mxu0 %v936_v5 }
  0x35   : > { %703 = vmatpush3.msra.mxu1 %v930_v2  ;;  %733 = vmatprep.subr.mxu0 %v891_v19 }
  0x36   : > { %705 = vmatmul.mubr.f32.vlgmr.msra.gmra.mxu1 %v192_v32  ;;  %734 = vmatpush3.msra.mxu0 %v934_v4 }
  0x37   : > { %735 = vmatprep.subr.mxu0 %v891_v19  ;;  %742 = vmatprep.subr.mxu1 %v891_v19 }
  0x38   : > { %736 = vmatpush3.msra.mxu0 %v932_v3  ;;  %743 = vmatpush3.msra.mxu1 %v960_v17 }
  0x39   : > { %737 = vmatprep.subr.mxu0 %v891_v19  ;;  %744 = vmatprep.subr.mxu1 %v891_v19 }
  0x3a   : > { %738 = vmatpush3.msra.mxu0 %v930_v2  ;;  %745 = vmatpush3.msra.mxu1 %v958_v16 }
  0x3b   : > { %746 = vmatprep.subr.mxu1 %v891_v19  ;;  %774 = vmatprep.mubr.msk.f32.mxu1 %vm892_vm2, %v891_v19 }
  0x3c   : > { %747 = vmatpush3.msra.mxu1 %v956_v15  ;;  %777 = vmatprep.subr.mxu0 %v891_v19 }
  0x3d   : > { %748 = vmatprep.subr.mxu1 %v891_v19  ;;  %669 = vmatprep.mubr.msk.f32.mxu0 %vm77_vm1, %v69_v33 }
  0x3e   : > { %749 = vmatpush3.msra.mxu1 %v954_v14  ;;  %670 = vmatmul.mubr.msk.f32.gmra.mxu0 %vm77_vm1, %v70_v34 }
  0x3f   : > { %750 = vmatprep.subr.mxu1 %v891_v19  ;;  %739 = vmatprep.mubr.msk.f32.mxu0 %vm892_vm2, %v891_v19 }
  0x40   : > { %751 = vmatpush3.msra.mxu1 %v952_v13 }
  0x41   : > { %752 = vmatprep.subr.mxu1 %v891_v19 }
  0x42   : > { %753 = vmatpush3.msra.mxu1 %v950_v12 }
  0x43   : > { %754 = vmatprep.subr.mxu1 %v891_v19 }
  0x44   : > { %755 = vmatpush3.msra.mxu1 %v948_v11 }
  0x45   : > { %756 = vmatprep.subr.mxu1 %v891_v19 }
  0x46   : > { %757 = vmatpush3.msra.mxu1 %v946_v10 }
  0x47   : > { %758 = vmatprep.subr.mxu1 %v891_v19 }
  0x48   : > { %759 = vmatpush3.msra.mxu1 %v944_v9 }
  0x49   : > { %760 = vmatprep.subr.mxu1 %v891_v19 }
  0x4a   : > { %761 = vmatpush3.msra.mxu1 %v942_v8 }
  0x4b   : > { %762 = vmatprep.subr.mxu1 %v891_v19 }
  0x4c   : > { %763 = vmatpush3.msra.mxu1 %v940_v7 }
  0x4d   : > { %764 = vmatprep.subr.mxu1 %v891_v19 }
  0x4e   : > { %765 = vmatpush3.msra.mxu1 %v938_v6 }
  0x4f   : > { %766 = vmatprep.subr.mxu1 %v891_v19 }
  0x50   : > { %767 = vmatpush3.msra.mxu1 %v936_v5 }
  0x51   : > { %768 = vmatprep.subr.mxu1 %v891_v19 }
  0x52   : > { %769 = vmatpush3.msra.mxu1 %v934_v4 }
  0x53   : > { %770 = vmatprep.subr.mxu1 %v891_v19 }
  0x54   : > { %771 = vmatpush3.msra.mxu1 %v932_v3 }
  0x55   : > { %772 = vmatprep.subr.mxu1 %v891_v19 }
  0x56   : > { %773 = vmatpush3.msra.mxu1 %v930_v2 }
  0xdb   : > { %v668_v35 = vpop.f32.mrf.mxu0 }
  0xdc   : > { %v166_v51 = vadd.f32 %v668_v35, %v965_v18 }
  0xdd   : > { %v160_v36 = vpop.f32.mrf.mxu0 }
  0xde   : > { %v161_v37 = vadd.f32 %v965_v18, %v160_v36 }
  0xf6   : > { %v259_v38 = vpop.f32.mrf.mxu1 }
  0xf7   : > { %v263_v39 = vadd.f32 %v259_v38, %v161_v37 }
  0xf8   : > { %v706_v40 = vpop.f32.mrf.mxu1 }
  0xf9   : > { %827 = vtanh.f32 %v263_v39 }
  0xfe   : > { %v671_v49 = vpop.f32.mrf.mxu0 }
  0xff   : > { %v176_v30 = vadd.f32 %v671_v49, %v965_v18 }
 0x100   : > { %v170_v50 = vpop.f32.mrf.mxu0 }
 0x101   : > { %v171_v63 = vadd.f32 %v965_v18, %v170_v50 }
 0x106   : > { %v1104_v42 = vpop.eup %827 }
 0x107   : > { %266 = vst [vmem:[%s1108_s28] sm:$0xff] %v1104_v42  ;;  %267 = vst [vmem:[#allocation2 + $0x10] sm:$0xff] %v1104_v42  ;;  %v269_v43 = vmul.f32 0.3125, %v1104_v42  ;;  %v359_v57 = vmul.f32 0.9375, %v1104_v42  ;;  %v450_v27 = vmul.f32 -0.3125, %v1104_v42 }
 0x109   : > { %v272_v45 = vadd.f32 %v271_v41, %v269_v43 }
 0x10b   : > { %v275_v47 = vadd.f32 %v274_v44, %v272_v45 }
 0x10d   : > { %v278_v48 = vadd.f32 %v277_v46, %v275_v47 }
 0x10f   : > { %740 = vmatmul.mubr.f32.vlgmr.msra.gmra.mxu0 %v278_v48 }
 0x110   : > { %778 = vmatpush3.msra.mxu0 %v960_v17  ;;  %809 = vmatprep.mubr.msk.f32.mxu0 %vm892_vm2, %v891_v19 }
 0x111   : > { %779 = vmatprep.subr.mxu0 %v891_v19 }
 0x112   : > { %780 = vmatpush3.msra.mxu0 %v958_v16 }
 0x113   : > { %781 = vmatprep.subr.mxu0 %v891_v19 }
 0x114   : > { %782 = vmatpush3.msra.mxu0 %v956_v15 }
 0x115   : > { %783 = vmatprep.subr.mxu0 %v891_v19 }
 0x116   : > { %784 = vmatpush3.msra.mxu0 %v954_v14 }
 0x117   : > { %785 = vmatprep.subr.mxu0 %v891_v19 }
 0x118   : > { %786 = vmatpush3.msra.mxu0 %v952_v13 }
 0x119   : > { %787 = vmatprep.subr.mxu0 %v891_v19 }
 0x11a   : > { %788 = vmatpush3.msra.mxu0 %v950_v12 }
 0x11b   : > { %789 = vmatprep.subr.mxu0 %v891_v19 }
 0x11c   : > { %790 = vmatpush3.msra.mxu0 %v948_v11 }
 0x11d   : > { %791 = vmatprep.subr.mxu0 %v891_v19 }
 0x11e   : > { %792 = vmatpush3.msra.mxu0 %v946_v10 }
 0x11f   : > { %793 = vmatprep.subr.mxu0 %v891_v19 }
 0x120   : > { %794 = vmatpush3.msra.mxu0 %v944_v9 }
 0x121   : > { %795 = vmatprep.subr.mxu0 %v891_v19 }
 0x122   : > { %796 = vmatpush3.msra.mxu0 %v942_v8 }
 0x123   : > { %797 = vmatprep.subr.mxu0 %v891_v19 }
 0x124   : > { %798 = vmatpush3.msra.mxu0 %v940_v7 }
 0x125   : > { %799 = vmatprep.subr.mxu0 %v891_v19 }
 0x126   : > { %800 = vmatpush3.msra.mxu0 %v938_v6 }
 0x127   : > { %801 = vmatprep.subr.mxu0 %v891_v19 }
 0x128   : > { %802 = vmatpush3.msra.mxu0 %v936_v5 }
 0x129   : > { %803 = vmatprep.subr.mxu0 %v891_v19 }
 0x12a   : > { %804 = vmatpush3.msra.mxu0 %v934_v4 }
 0x12b   : > { %805 = vmatprep.subr.mxu0 %v891_v19 }
 0x12c   : > { %806 = vmatpush3.msra.mxu0 %v932_v3 }
 0x12d   : > { %807 = vmatprep.subr.mxu0 %v891_v19 }
 0x12e   : > { %808 = vmatpush3.msra.mxu0 %v930_v2 }
 0x1cf   : > { %v345_v52 = vpop.f32.mrf.mxu0 }
 0x1d0   : > { %v349_v53 = vadd.f32 %v345_v52, %v166_v51 }
 0x1d1   : > { %v741_v54 = vpop.f32.mrf.mxu0 }
 0x1d2   : > { %829 = vtanh.f32 %v349_v53 }
 0x1df   : > { %v830_v55 = vpop.eup %829 }
 0x1e0   : > { %580 = vst [vmem:[%s1108_s28 + $0x8] sm:$0xff] %v830_v55  ;;  %355 = vst [vmem:[#allocation2] sm:$0xff] %v830_v55  ;;  %v357_v56 = vmul.f32 0.3125, %v830_v55  ;;  %v447_v25 = vmul.f32 0.9375, %v830_v55 }
 0x1e2   : > { %v360_v59 = vadd.f32 %v359_v57, %v357_v56 }
 0x1e4   : > { %v363_v61 = vadd.f32 %v362_v58, %v360_v59 }
 0x1e6   : > { %v366_v62 = vadd.f32 %v365_v60, %v363_v61 }
 0x1e8   : > { %775 = vmatmul.mubr.f32.vlgmr.msra.gmra.mxu1 %v366_v62 }
 0x2a8   : > { %v433_v0 = vpop.f32.mrf.mxu1 }
 0x2a9   : > { %v437_v19 = vadd.f32 %v433_v0, %v171_v63 }
 0x2aa   : > { %v776_v20 = vpop.f32.mrf.mxu1 }
 0x2ab   : > { %831 = vtanh.f32 %v437_v19 }
 0x2b8   : > { %v832_v21 = vpop.eup %831 }
 0x2b9   : > { %583 = vst [vmem:[%s1108_s28 + $0x10] sm:$0xff] %v832_v21  ;;  %443 = vst [vmem:[#allocation2 + $0x18] sm:$0xff] %v832_v21  ;;  %v445_v24 = vmul.f32 0.3125, %v832_v21 }
 0x2bb   : > { %v448_v26 = vadd.f32 %v447_v25, %v445_v24 }
 0x2bd   : > { %v451_v28 = vadd.f32 %v450_v27, %v448_v26 }
 0x2bf   : > { %v454_v29 = vadd.f32 %v453_v23, %v451_v28 }
 0x2c1   : > { %810 = vmatmul.mubr.f32.vlgmr.msra.gmra.mxu0 %v454_v29 }
 0x381   : > { %v521_v31 = vpop.f32.mrf.mxu0 }
 0x382   : > { %v525_v32 = vadd.f32 %v521_v31, %v176_v30 }
 0x383   : > { %v811_v33 = vpop.f32.mrf.mxu0 }
 0x384   : > { %833 = vtanh.f32 %v525_v32 }
 0x38e   :  { %62 = sbr.rel (!%p60_p5) target bundleno = 21 (0x15), region = 59 }
 0x391   : > { %v834_v34 = vpop.eup %833 }
 0x392   : > { %586 = vst [vmem:[%s1108_s28 + $0x18] sm:$0xff] %v834_v34  ;;  %531 = vst [vmem:[#allocation2 + $0x8] sm:$0xff] %v834_v34 }
 0x393   :  { %866 = shalt.err (!%p863_p10)
}
 0x394   :  { %543 = dma.vmem_to_hbm [thread:$0]  %s538_s30, 1024, %s1173_s4, [#allocation5], %s888_s18, %s888_s18, %s889_s19  }
 0x395   :  { %881 = dma.done.wait [#allocation5], 1024  }
 0x396   :  { %882 = vsyncadd [#allocation5], 4294966272 }
 0x397   :  { %547 = vsyncpa [#allocation4], 1 }
 0x398   :  { %548 = vsyncpa [#allocation5], 1 }

</bundles_post_ra>
